<compile_context>
chip_gen: v5e
topology: v5e:2x2
jax: 0.10.0
libtpu: 0.0.40
codegen_flags: <defaults>
</compile_context>

<pallas_src>
import functools

import jax
import jax.numpy as jnp
import numpy as np
from jax import lax
from jax.experimental import pallas as pl
from jax.experimental.pallas import tpu as pltpu


# ----------------------------------------------------------------------------
# Pallas kernel: one (batch, time-tile) block per grid step.
# ----------------------------------------------------------------------------
def _layer_norm_kernel(x_ref, gamma_ref, beta_ref, o_ref, *, eps, inv_c):
    # x_ref block: (1, C, Tt) -- channels on sublanes, time on lanes.
    x = x_ref[0].astype(jnp.float32)                       # (C, Tt)
    mean = jnp.sum(x, axis=0, keepdims=True) * inv_c       # (1, Tt) sublane reduce
    # Centered two-pass variance; (x - mean) is *recomputed* in the output pass
    # instead of being kept live across both passes (lower VMEM/vreg pressure).
    var = jnp.sum((x - mean) * (x - mean), axis=0, keepdims=True) * inv_c
    inv = lax.rsqrt(var + eps)                             # EUP rsqrt
    o_ref[0] = ((x - mean) * inv * gamma_ref[...]          # (C,1) bcast over lanes
                + beta_ref[...]).astype(o_ref.dtype)


# ----------------------------------------------------------------------------
# Tile / VMEM-budget selection.
# ----------------------------------------------------------------------------
def _pick_t_tile(T, C, itemsize, batch):
    t_ceil = pl.cdiv(max(int(T), 1), 128) * 128
    try:
        vmem_cap = int(pltpu.get_tpu_info().vmem_capacity_bytes)
    except Exception:
        vmem_cap = 64 << 20                    # v7x floor; safe everywhere
    vmem_limit = min(vmem_cap // 2, 64 << 20)  # scoped limit we request
    usable = int(vmem_limit * 0.6)             # headroom for compiler scratch
    # Per-lane VMEM cost: double-buffered input + output blocks at I/O dtype,
    # plus roughly one f32 working copy of the tile inside the kernel body.
    bytes_per_lane = C * (4 * itemsize + 4)
    t_cap = max(128, (usable // max(bytes_per_lane, 1)) // 128 * 128)
    t_tile = max(128, min(2048, t_cap, t_ceil))
    # Keep the pipeline fed (and both v7x TensorCores busy): aim for >= 8
    # total grid steps before dropping below 512-lane tiles.
    while t_tile > 512 and batch * pl.cdiv(int(T), t_tile) < 8:
        t_tile = max(128, (t_tile // 2) // 128 * 128)
    return t_tile, vmem_limit


# ----------------------------------------------------------------------------
# Wrapper (any ndim >= 2: trailing dims are flattened onto the lanes, exactly
# like the PyTorch module which normalizes dim 1 for any rank).
# ----------------------------------------------------------------------------
def layer_norm(x, gamma, beta, *, eps=1e-4):
    if x.ndim < 2:
        raise ValueError("layer_norm expects at least 2 dims (N, C, ...)")
    orig_shape = x.shape
    B, C = orig_shape[0], orig_shape[1]

    # (B, C, T) with T = prod(trailing dims). No padding: ragged last T-tile is
    # handled by Pallas edge-block masking (per-lane normalization => OOB lanes
    # are independent and never stored).
    x3 = x.reshape(B, C, -1)
    T = x3.shape[-1]

    t_tile, vmem_limit = _pick_t_tile(T, C, x3.dtype.itemsize, B)

    gamma2 = gamma.reshape(C, 1).astype(jnp.float32)
    beta2 = beta.reshape(C, 1).astype(jnp.float32)

    kernel = functools.partial(_layer_norm_kernel,
                               eps=float(eps), inv_c=1.0 / float(C))

    out = pl.pallas_call(
        kernel,
        out_shape=jax.ShapeDtypeStruct((B, C, T), x.dtype),
        grid=(B, pl.cdiv(T, t_tile)),
        in_specs=[
            pl.BlockSpec((1, C, t_tile), lambda b, t: (b, 0, t)),   # x tile
            pl.BlockSpec((C, 1), lambda b, t: (0, 0)),              # gamma (resident)
            pl.BlockSpec((C, 1), lambda b, t: (0, 0)),              # beta  (resident)
        ],
        out_specs=pl.BlockSpec((1, C, t_tile), lambda b, t: (b, 0, t)),
        compiler_params=pltpu.CompilerParams(
            dimension_semantics=("parallel", "parallel"),
            vmem_limit_bytes=int(vmem_limit)),
    )(x3, gamma2, beta2)

    return out.reshape(orig_shape)


# ----------------------------------------------------------------------------
# Pure-JAX reference matching the PyTorch module exactly.
# ----------------------------------------------------------------------------
def layer_norm_ref(x, gamma, beta, eps=1e-4):
    mean = jnp.mean(x, axis=1, keepdims=True)
    var = jnp.mean((x - mean) ** 2, axis=1, keepdims=True)
    xn = (x - mean) * lax.rsqrt(var + eps)
    shape = [1, -1] + [1] * (x.ndim - 2)
    return xn * gamma.reshape(shape) + beta.reshape(shape)


# ----------------------------------------------------------------------------
# Main
# ----------------------------------------------------------------------------
if __name__ == "__main__":
    EPS = 1e-4  # module default eps=0.0001
    key = jax.random.PRNGKey(0)
    kx, kg, kb, kx2 = jax.random.split(key, 4)

    # --- f32, NCT layout, T deliberately not 128-aligned (masked edge tile) --
    B, C, T = 2, 192, 600
    x = jax.random.normal(kx, (B, C, T), jnp.float32)
    gamma = 1.0 + 0.1 * jax.random.normal(kg, (C,), jnp.float32)
    beta = 0.1 * jax.random.normal(kb, (C,), jnp.float32)

    out = jax.block_until_ready(layer_norm(x, gamma, beta, eps=EPS))
    ref = layer_norm_ref(x, gamma, beta, eps=EPS)
    np.testing.assert_allclose(np.asarray(out), np.asarray(ref),
                               rtol=1e-4, atol=1e-4)

    # --- bf16 I/O, rank-4 input (exercises flattening + bf16 HBM traffic) ----
    B2, C2, H2, W2 = 2, 32, 10, 13
    x2 = jax.random.normal(kx2, (B2, C2, H2, W2), jnp.float32).astype(jnp.bfloat16)
    g2 = jnp.ones((C2,), jnp.float32)
    b2 = jnp.zeros((C2,), jnp.float32)
    out2 = jax.block_until_ready(layer_norm(x2, g2, b2, eps=EPS))
    ref2 = layer_norm_ref(x2.astype(jnp.float32), g2, b2, eps=EPS)
    np.testing.assert_allclose(np.asarray(out2).astype(np.float32),
                               np.asarray(ref2), rtol=2e-2, atol=2e-2)

    print("KERNEL_OK")
</pallas_src>

<mosaic_0001>
module attributes {stable_mosaic.version = 11 : i64} {
  func.func @_layer_norm_kernel(%arg0: i32, %arg1: i32, %arg2: memref<1x192x256xf32, #tpu.memory_space<vmem>>, %arg3: memref<192x1xf32, #tpu.memory_space<vmem>>, %arg4: memref<192x1xf32, #tpu.memory_space<vmem>>, %arg5: memref<1x192x256xf32, #tpu.memory_space<vmem>>) attributes {dimension_semantics = [#tpu.dimension_semantics<parallel>, #tpu.dimension_semantics<parallel>], iteration_bounds = array<i64: 2, 3>, scalar_prefetch = 0 : i64, scratch_operands = 0 : i64, tpu.core_type = #tpu.core_type<tc>, window_params = [{transform_indices = @transform_0, window_bounds = array<i64: 1, 192, 256>}, {pipeline_mode = #tpu.pipeline_mode<synchronous>, transform_indices = @transform_1, window_bounds = array<i64: 192, 1>}, {pipeline_mode = #tpu.pipeline_mode<synchronous>, transform_indices = @transform_2, window_bounds = array<i64: 192, 1>}, {transform_indices = @transform_3, window_bounds = array<i64: 1, 192, 256>}]} {
    %c0 = arith.constant 0 : index
    %c0_0 = arith.constant 0 : index
    %c0_1 = arith.constant 0 : index
    %0 = vector.load %arg2[%c0, %c0_0, %c0_1] : memref<1x192x256xf32, #tpu.memory_space<vmem>>, vector<1x192x256xf32>
    %1 = vector.shape_cast %0 : vector<1x192x256xf32> to vector<192x256xf32>
    %cst = arith.constant dense<0.000000e+00> : vector<256xf32>
    %2 = vector.multi_reduction <add>, %1, %cst [0] : vector<192x256xf32> to vector<256xf32>
    %3 = vector.shape_cast %2 : vector<256xf32> to vector<1x256xf32>
    %cst_2 = arith.constant 0.00520833349 : f32
    %4 = vector.broadcast %cst_2 : f32 to vector<1x256xf32>
    %5 = arith.mulf %3, %4 : vector<1x256xf32>
    %6 = vector.broadcast %5 : vector<1x256xf32> to vector<192x256xf32>
    %7 = arith.subf %1, %6 : vector<192x256xf32>
    %8 = vector.broadcast %5 : vector<1x256xf32> to vector<192x256xf32>
    %9 = arith.subf %1, %8 : vector<192x256xf32>
    %10 = arith.mulf %7, %9 : vector<192x256xf32>
    %cst_3 = arith.constant dense<0.000000e+00> : vector<256xf32>
    %11 = vector.multi_reduction <add>, %10, %cst_3 [0] : vector<192x256xf32> to vector<256xf32>
    %12 = vector.shape_cast %11 : vector<256xf32> to vector<1x256xf32>
    %cst_4 = arith.constant 0.00520833349 : f32
    %13 = vector.broadcast %cst_4 : f32 to vector<1x256xf32>
    %14 = arith.mulf %12, %13 : vector<1x256xf32>
    %cst_5 = arith.constant 9.99999974E-5 : f32
    %15 = vector.broadcast %cst_5 : f32 to vector<1x256xf32>
    %16 = arith.addf %14, %15 : vector<1x256xf32>
    %17 = math.rsqrt %16 : vector<1x256xf32>
    %18 = vector.broadcast %5 : vector<1x256xf32> to vector<192x256xf32>
    %19 = arith.subf %1, %18 : vector<192x256xf32>
    %20 = vector.broadcast %17 : vector<1x256xf32> to vector<192x256xf32>
    %21 = arith.mulf %19, %20 : vector<192x256xf32>
    %c0_6 = arith.constant 0 : index
    %c0_7 = arith.constant 0 : index
    %22 = vector.load %arg3[%c0_6, %c0_7] : memref<192x1xf32, #tpu.memory_space<vmem>>, vector<192x1xf32>
    %23 = vector.broadcast %22 : vector<192x1xf32> to vector<192x256xf32>
    %24 = arith.mulf %21, %23 : vector<192x256xf32>
    %c0_8 = arith.constant 0 : index
    %c0_9 = arith.constant 0 : index
    %25 = vector.load %arg4[%c0_8, %c0_9] : memref<192x1xf32, #tpu.memory_space<vmem>>, vector<192x1xf32>
    %26 = vector.broadcast %25 : vector<192x1xf32> to vector<192x256xf32>
    %27 = arith.addf %24, %26 : vector<192x256xf32>
    %c0_10 = arith.constant 0 : index
    %c0_11 = arith.constant 0 : index
    %c0_12 = arith.constant 0 : index
    %28 = vector.load %arg5[%c0_10, %c0_11, %c0_12] : memref<1x192x256xf32, #tpu.memory_space<vmem>>, vector<1x192x256xf32>
    %29 = vector.shape_cast %28 : vector<1x192x256xf32> to vector<192x256xf32>
    %30 = vector.shape_cast %27 : vector<192x256xf32> to vector<1x192x256xf32>
    tpu.vector_store %arg5[%c0_10, %c0_11, %c0_12], %30 {strides = array<i32>} : memref<1x192x256xf32, #tpu.memory_space<vmem>>, vector<1x192x256xf32>,
    return
  }
  func.func @transform_0(%arg0: i32, %arg1: i32) -> (i32, i32, i32) {
    %c0_i32 = arith.constant 0 : i32
    %c0_i32_0 = arith.constant 0 : i32
    return %arg0, %c0_i32, %arg1 : i32, i32, i32
  }
  func.func @transform_1(%arg0: i32, %arg1: i32) -> (i32, i32) {
    %c0_i32 = arith.constant 0 : i32
    %c0_i32_0 = arith.constant 0 : i32
    %c0_i32_1 = arith.constant 0 : i32
    return %c0_i32, %c0_i32_0 : i32, i32
  }
  func.func @transform_2(%arg0: i32, %arg1: i32) -> (i32, i32) {
    %c0_i32 = arith.constant 0 : i32
    %c0_i32_0 = arith.constant 0 : i32
    %c0_i32_1 = arith.constant 0 : i32
    return %c0_i32, %c0_i32_0 : i32, i32
  }
  func.func @transform_3(%arg0: i32, %arg1: i32) -> (i32, i32, i32) {
    %c0_i32 = arith.constant 0 : i32
    %c0_i32_0 = arith.constant 0 : i32
    return %arg0, %c0_i32, %arg1 : i32, i32, i32
  }
}

</mosaic_0001>

<bundles_post_ra>
// kernel: tpu_custom_call.1
= control target key start
LH: loop header
LB: loop body
LE: loop exit
PB: predicated region body
PF: predicated region fallthrough
CT: control target
= control target key end

     0   :  { %8 = vsyncpa [#allocation3], 0  ;;  %s2473_s0 = inlined_call_operand.hbm [shape: f32[2,192,600], index: 0, kind: input, shape index: {}]   ;;  %s2474_s1 = inlined_call_operand.vmem [shape: f32[192,1], index: 1, kind: input, shape index: {}]   ;;  %s2475_s2 = inlined_call_operand.vmem [shape: f32[192,1], index: 2, kind: input, shape index: {}]   ;;  %s2476_s3 = inlined_call_operand.hbm [shape: f32[2,192,600], index: 3, kind: output, shape index: {}]  }
   0x1   :  { %10 = vsyncpa [#allocation3 + $0x1], 0 }
   0x2   :  { %11 = vsyncpa [#allocation4], 0 }
   0x3   :  { %13 = vsyncpa [#allocation4 + $0x1], 0  ;;  %s1392_s12 = smov 0   ;;  %s1394_s13 = smov 0  }
   0x4   :  { %s1396_s14 = smov 0   ;;  %s1398_s15 = smov 0  }
   0x5   :  { %s1400_s16 = smov 0   ;;  %s1402_s17 = smov 0  }
   0x6   :  { %s1404_s18 = smov 0   ;;  %s1406_s19 = smov 0  }
   0x7 LB: > { %2506 = sst [smem:[#allocation8_spill]] %s1355_s17  ;;  %s1109_s20 = sadd.s32 4294967295, %s1363_s19   ;;  %s1363_s19 = sphi %s1406_s19, %s19_s19   ;;  %s1359_s18 = sphi %s1404_s18, %s2576_s18   ;;  %s1355_s17 = sphi %s1402_s17, %s2571_s17   ;;  %s1351_s16 = sphi %s1400_s16, %s2570_s16   ;;  %s1347_s15 = sphi %s1398_s15, %s2569_s15   ;;  %s1343_s14 = sphi %s1396_s14, %s2575_s14   ;;  %s1339_s13 = sphi %s1394_s13, %s2574_s13   ;;  %s1335_s12 = sphi %s1392_s12, %s2573_s12  }
   0x8   : > { %2507 = sst [smem:[#allocation9_spill]] %s1359_s18  ;;  %s1110_s21 = sadd.s32 4294967294, %s1363_s19  }
   0x9   : > { %s28_s22 = sadd.s32 1, %s1355_s17  ;;  %s31_s23 = sadd.s32 1, %s1359_s18 }
   0xa   : > { %p29_p0 = scmp.ge.s32.totalorder %s28_s22, 3  ;;  %p47_p1 = scmp.ne.s32.totalorder %s1343_s14, %s1339_s13 }
   0xb   : > { %p48_p2 = scmp.eq.s32.totalorder %s1363_s19, 0  ;;  %p53_p5 = scmp.ne.s32.totalorder %s1339_s13, %s1335_s12 }
   0xc   : > { %s2578_s22 = smov (%p29_p0, %s28_s22), 0  ;;  %s2580_s23 = smov (!%p29_p0, %s31_s23), %s1359_s18 }
   0xd   : > { %2508 = sst [smem:[#allocation10_spill]] %s2578_s22  ;;  %s36_s24 = ssub.s32 %s1355_s17, %s2578_s22 }
   0xe   : > { %p1444_p3 = por %p48_p2, %p47_p1  ;;  %p33_p4 = scmp.ge.s32.totalorder %s2580_s23, 2 }
   0xf   : > { %p54_p6 = scmp.eq.s32.totalorder %s1109_s20, 0  ;;  %p121_p7 = scmp.eq.s32.totalorder %s1109_s20, 5 }
  0x10   : > { %s2582_s23 = smov (%p33_p4, %s2580_s23), 0  ;;  %p127_p10 = scmp.eq.s32.totalorder %s1110_s21, 5 }
  0x11   : > { %2510 = sst [smem:[#allocation11_spill]] %s2582_s23  ;;  %p1452_p8 = por %p54_p6, %p53_p5 }
  0x12   : > { %p1456_p9 = por %p121_p7, %p47_p1  ;;  %s35_s28 = ssub.s32 %s1359_s18, %s2582_s23 }
  0x13   : > { %s37_s29 = sor.u32 %s36_s24, %s35_s28  ;;  %s40_s30 = sadd.s32 1, %s1343_s14 }
  0x14   : > { %p38_p11 = scmp.eq.s32.totalorder %s37_s29, 0  ;;  %p1463_p12 = por %p127_p10, %p53_p5 }
  0x15   : > { %p1112_p13 = scmp.ge.s32.totalorder %s1363_s19, 6 }
  0x16   : > { %s1468_s5 = scalar_select %p38_p11, %s1343_s14, %s40_s30  }
  0x17   : > { %149 = sbr.rel (%p1112_p13) target bundleno = 59 (0x3b), region = 24 }
  0x18   : > { %2514 = sst [smem:[#allocation12_spill]] %s1468_s5 }
  0x1c   : > { %152 = sbr.rel (!%p1444_p3) target bundleno = 59 (0x3b), region = 28  ;;  %s153_s6 = sand.u32 (%p1444_p3), 1, %s1343_s14  }
  0x1d   : > { %s1113_s7 = sshll.u32 (%p1444_p3), %s1355_s17, 1  ;;  %s1128_s8 = smul.u32 (%p1444_p3), 384, %s153_s6 }
  0x1e   : > { %s159_s9 = ssub.s32 (%p1444_p3), 5, %s1113_s7  ;;  %s1478_s21 = scalar_lea.sflag (%p1444_p3), [#allocation3], %s153_s6 }
  0x1f   : > { %p160_p0 = scmp.lt.s32.totalorder (%p1444_p3), %s159_s9, 2  ;;  %s157_s24 = scalar_lea.vmem (%p1444_p3), [#allocation2], %s1128_s8 }
  0x21   : > { %s2584_s9 = smov (!%p160_p0, %s159_s9), 2 }
  0x22   : > { %s162_s10 = smul.u32 192, %s2584_s9 }
  0x24   : > { %s163_s11 = ssub.s32 384, %s162_s10 }
  0x25   : > { %s164_s20 = sshll.u32 %s163_s11, 4 }
  0x26   : > { %165 = vsyncadd %s1478_s21, %s164_s20  ;;  %p1481_p1 = scmp.ne.s32.totalorder %s162_s10, 0  ;;  %s1129_s28 = smul.u32 120, %s1359_s18 }
  0x27   : > { %s1487_s30 = sshll.u32 %s157_s24, 4  ;;  %s1118_s11 = smul.u32 3072, %s2584_s9  ;;  %s176_s30 = int_to_ptr.vmem [resolvable:$true] %s1487_s30 }
  0x28   : > { %s168_s23 = sadd.s32 %s1129_s28, %s1113_s7  ;;  %s1234_s24 = sshra.s32 %s176_s30, 4  ;;  %s1235_s24 = int_to_ptr.vmem [resolvable:$true] %s1234_s24 }
  0x29   : > { %s1115_s6 = sshll.u32 %s168_s23, 3  ;;  %s1217_s10 = sshrl.u32 %s1118_s11, 4 }
  0x2a   : > { %s170_s22 = scalar_lea.hbm %s2473_s0, %s1115_s6  ;;  %s1253_s5 = sshll.u32 %s1217_s10, 4 }
  0x2b   : > { %s173_s17 = sshll.u32 %s170_s22, 4  ;;  %p1219_p2 = scmp.ne.s32.totalorder %s1253_s5, %s1118_s11  ;;  %s174_s17 = int_to_ptr.hbm [resolvable:$true] %s173_s17 }
  0x2c   : > { %s1220_s18 = sadd.s32 1, %s1217_s10  ;;  %s1365_s23 = smov [#allocation2]  }
  0x2d   : > { %s2586_s18 = smov (!%p1219_p2, %s1220_s18), %s1217_s10  ;;  %s1245_s7 = scalar_lea.vmem %s1365_s23, 768 }
  0x2e   : > { %s1241_s29 = scalar_lea.vmem %s1235_s24, %s2586_s18 }
  0x2f   : > { %p1242_p3 = scmp.ne.s32.totalorder %s1235_s24, %s1241_s29  ;;  %p1247_p6 = scmp.lt.s32.totalorder %s1245_s7, %s1241_s29 }
  0x31   : > { %p1243_p4 = pnand %p1242_p3, %p1481_p1 }
  0x33   : > { %p1244_p5 = pneg %p1243_p4 }
  0x35   : > { %p1249_p7 = pnand %p1247_p6, %p1244_p5 }
  0x37   : > { %1252 = shalt.err (!%p1249_p7)
}
  0x38   : > { %s1366_s22 = smov 640   ;;  %s1367_s5 = smov 256  }
  0x39   : > { %s2516_s28 = sshll.u32 %s2584_s9, 3 }
  0x3a   : > { %181 = dma.hbm_to_vmem [thread:$0]  (%p1481_p1), %s174_s17, %s1118_s11, %s176_s30, %s1478_s21, %s1366_s22, %s1367_s5, %s2516_s28  }
  0x3b PF: > { %p1119_p10 = scmp.ge.s32.totalorder %s1363_s19, 1  ;;  %p183_p11 = scmp.lt.s32.totalorder %s1363_s19, 7 }
  0x3d   : > { %p184_p13 = pnand %p1119_p10, %p183_p11 }
  0x3f   : > { %187 = sbr.rel (%p184_p13) target bundleno = 354 (0x162), region = 32 }
  0x44   : > { %s1508_s18 = sand.u32 1, %s1339_s13  }
  0x45   : > { %s1130_s29 = smul.u32 384, %s1508_s18  ;;  %s190_s25 = scalar_lea.sflag [#allocation3], %s1508_s18 }
  0x47   : > { %s1514_s9 = scalar_lea.vmem [#allocation2], %s1130_s29 }
  0x48   : > { %1326 = dma.done.wait (%p1452_p8), %s190_s25, 6144  }
  0x49   : > { %1328 = vsyncadd (%p1452_p8), %s190_s25, 4294961152  ;;  %v1368_v0 = vmov 0   ;;  %v565_v1 = vld [vmem:[%s2474_s1 + $0x20] sm:$0xff]  ;;  %v563_v2 = vld [vmem:[%s2474_s1 + $0x10] sm:$0xff]  ;;  %s2226_s5 = scalar_lea.vmem [#allocation5], %s1130_s29  ;;  %s994_s29 = scalar_lea.sflag [#allocation4], %s1508_s18 }
  0x4a   : > { %1210 = vset.pattern.permute.xlu2 %v1368_v0  ;;  %1209 = vset.pattern.permute.xlu1 %v1368_v0  ;;  %v561_v3 = vld [vmem:[%s2474_s1] sm:$0xff]  ;;  %v566_v4 = vld [vmem:[%s2474_s1 + $0x28] sm:$0xff]  ;;  %v564_v5 = vld [vmem:[%s2474_s1 + $0x18] sm:$0xff]  ;;  %s1120_s28 = sshll.u32 (%p1456_p9), %s1347_s15, 1 }
  0x4b   : > { %1208 = vset.pattern.permute.xlu0 %v1368_v0  ;;  %607 = vperm.xlu2 %1210, %v565_v1   ;;  %v1536_v6 = vld [vmem:[%s1514_s9] sm:$0xff]  ;;  %v1539_v7 = vld [vmem:[%s1514_s9 + $0x8] sm:$0xff]  ;;  %v1542_v8 = vld [vmem:[%s1514_s9 + $0x10] sm:$0xff] }
  0x4c   : > { %597 = vperm.xlu1 %1209, %v563_v2   ;;  %587 = vperm.xlu0 %1208, %v561_v3   ;;  %v1545_v9 = vld [vmem:[%s1514_s9 + $0x18] sm:$0xff]  ;;  %v1548_v10 = vld [vmem:[%s1514_s9 + $0x20] sm:$0xff]  ;;  %v562_v11 = vld [vmem:[%s2474_s1 + $0x8] sm:$0xff]  ;;  %v275_v13 = vadd.f32 %v1542_v8, %v1536_v6 }
  0x4d   : > { %v1554_v12 = vld [vmem:[%s1514_s9 + $0x28] sm:$0xff]  ;;  %v304_v14 = vadd.f32 %v1545_v9, %v1539_v7  ;;  %v1561_v15 = vld [vmem:[%s1514_s9 + $0x30] sm:$0xff]  ;;  %v1564_v16 = vld [vmem:[%s1514_s9 + $0x38] sm:$0xff] }
  0x4e   : > { %v276_v17 = vadd.f32 %v275_v13, %v1548_v10  ;;  %v1569_v19 = vld [vmem:[%s1514_s9 + $0x40] sm:$0xff]  ;;  %v1572_v20 = vld [vmem:[%s1514_s9 + $0x48] sm:$0xff]  ;;  %v1577_v23 = vld [vmem:[%s1514_s9 + $0x50] sm:$0xff] }
  0x4f   : > { %v305_v18 = vadd.f32 %v304_v14, %v1554_v12  ;;  %v1580_v24 = vld [vmem:[%s1514_s9 + $0x58] sm:$0xff]  ;;  %v569_v25 = vld [vmem:[%s2474_s1 + $0x40] sm:$0xff]  ;;  %v1594_v30 = vld [vmem:[%s1514_s9 + $0x68] sm:$0xff] }
  0x50   : > { %v277_v21 = vadd.f32 %v276_v17, %v1561_v15  ;;  %v568_v28 = vld [vmem:[%s2474_s1 + $0x38] sm:$0xff]  ;;  %v1591_v29 = vld [vmem:[%s1514_s9 + $0x60] sm:$0xff]  ;;  %v567_v31 = vld [vmem:[%s2474_s1 + $0x30] sm:$0xff] }
  0x51   : > { %v306_v22 = vadd.f32 %v305_v18, %v1564_v16  ;;  %v1602_v34 = vld [vmem:[%s1514_s9 + $0x70] sm:$0xff]  ;;  %v1605_v35 = vld [vmem:[%s1514_s9 + $0x78] sm:$0xff]  ;;  %v1610_v38 = vld [vmem:[%s1514_s9 + $0x80] sm:$0xff] }
  0x52   : > { %v278_v26 = vadd.f32 %v277_v21, %v1569_v19  ;;  %v1613_v39 = vld [vmem:[%s1514_s9 + $0x88] sm:$0xff]  ;;  %v1618_v42 = vld [vmem:[%s1514_s9 + $0x90] sm:$0xff]  ;;  %v1621_v43 = vld [vmem:[%s1514_s9 + $0x98] sm:$0xff] }
  0x53   : > { %612 = vperm.xlu2 %1210, %v566_v4   ;;  %v307_v27 = vadd.f32 %v306_v22, %v1572_v20  ;;  %v572_v44 = vld [vmem:[%s2474_s1 + $0x58] sm:$0xff]  ;;  %v571_v47 = vld [vmem:[%s2474_s1 + $0x50] sm:$0xff]  ;;  %v1632_v48 = vld [vmem:[%s1514_s9 + $0xa0] sm:$0xff] }
  0x54   : > { %602 = vperm.xlu1 %1209, %v564_v5   ;;  %592 = vperm.xlu0 %1208, %v562_v11   ;;  %v279_v32 = vadd.f32 %v278_v26, %v1577_v23  ;;  %v1635_v49 = vld [vmem:[%s1514_s9 + $0xa8] sm:$0xff]  ;;  %v1643_v53 = vld [vmem:[%s1514_s9 + $0xb0] sm:$0xff]  ;;  %v1646_v54 = vld [vmem:[%s1514_s9 + $0xb8] sm:$0xff] }
  0x55   : > { %v308_v33 = vadd.f32 %v307_v27, %v1580_v24  ;;  %v570_v50 = vld [vmem:[%s2474_s1 + $0x48] sm:$0xff]  ;;  %v1651_v57 = vld [vmem:[%s1514_s9 + $0xc0] sm:$0xff]  ;;  %v1659_v61 = vld [vmem:[%s1514_s9 + $0xd0] sm:$0xff] }
  0x56   : > { %v280_v36 = vadd.f32 %v279_v32, %v1591_v29  ;;  %v1654_v58 = vld [vmem:[%s1514_s9 + $0xc8] sm:$0xff]  ;;  %v1662_v62 = vld [vmem:[%s1514_s9 + $0xd8] sm:$0xff]  ;;  %v575_v63 = vld [vmem:[%s2474_s1 + $0x70] sm:$0xff] }
  0x57   : > { %v309_v37 = vadd.f32 %v308_v33, %v1594_v30  ;;  %v574_v2 = vld [vmem:[%s2474_s1 + $0x68] sm:$0xff]  ;;  %v1673_v3 = vld [vmem:[%s1514_s9 + $0xe0] sm:$0xff]  ;;  %v1684_v14 = vld [vmem:[%s1514_s9 + $0xf0] sm:$0xff] }
  0x58   : > { %v281_v40 = vadd.f32 %v280_v36, %v1602_v34  ;;  %v1676_v4 = vld [vmem:[%s1514_s9 + $0xe8] sm:$0xff]  ;;  %v573_v5 = vld [vmem:[%s2474_s1 + $0x60] sm:$0xff]  ;;  %v1687_v17 = vld [vmem:[%s1514_s9 + $0xf8] sm:$0xff] }
  0x59   : > { %v310_v41 = vadd.f32 %v309_v37, %v1605_v35  ;;  %v1692_v22 = vld [vmem:[%s1514_s9 + $0x100] sm:$0xff]  ;;  %v578_v32 = vld [vmem:[%s2474_s1 + $0x88] sm:$0xff] }
  0x5a   : > { %v282_v45 = vadd.f32 %v281_v40, %v1610_v38  ;;  %v577_v37 = vld [vmem:[%s2474_s1 + $0x80] sm:$0xff] }
  0x5b   : > { %627 = vperm.xlu2 %1210, %v569_v25   ;;  %v311_v46 = vadd.f32 %v310_v41, %v1613_v39  ;;  %v1695_v25 = vld [vmem:[%s1514_s9 + $0x108] sm:$0xff]  ;;  %v1714_v40 = vld [vmem:[%s1514_s9 + $0x120] sm:$0xff] }
  0x5c   : > { %622 = vperm.xlu1 %1209, %v568_v28   ;;  %617 = vperm.xlu0 %1208, %v567_v31   ;;  %v283_v51 = vadd.f32 %v282_v45, %v1618_v42  ;;  %v1700_v28 = vld [vmem:[%s1514_s9 + $0x110] sm:$0xff]  ;;  %v1703_v31 = vld [vmem:[%s1514_s9 + $0x118] sm:$0xff]  ;;  %v1717_v41 = vld [vmem:[%s1514_s9 + $0x128] sm:$0xff] }
  0x5d   : > { %v312_v52 = vadd.f32 %v311_v46, %v1621_v43 }
  0x5e   : > { %v284_v55 = vadd.f32 %v283_v51, %v1632_v48 }
  0x5f   : > { %v313_v56 = vadd.f32 %v312_v52, %v1635_v49 }
  0x60   : > { %v285_v59 = vadd.f32 %v284_v55, %v1643_v53  ;;  %v1733_v55 = vld [vmem:[%s1514_s9 + $0x140] sm:$0xff] }
  0x61   : > { %v314_v60 = vadd.f32 %v313_v56, %v1646_v54  ;;  %v1736_v56 = vld [vmem:[%s1514_s9 + $0x148] sm:$0xff] }
  0x62   : > { %v286_v0 = vadd.f32 %v285_v59, %v1651_v57 }
  0x63   : > { %642 = vperm.xlu2 %1210, %v572_v44   ;;  %v315_v1 = vadd.f32 %v314_v60, %v1654_v58  ;;  %v576_v44 = vld [vmem:[%s2474_s1 + $0x78] sm:$0xff] }
  0x64   : > { %637 = vperm.xlu1 %1209, %v571_v47   ;;  %632 = vperm.xlu0 %1208, %v570_v50   ;;  %v287_v11 = vadd.f32 %v286_v0, %v1659_v61  ;;  %v1725_v47 = vld [vmem:[%s1514_s9 + $0x130] sm:$0xff]  ;;  %v1728_v50 = vld [vmem:[%s1514_s9 + $0x138] sm:$0xff] }
  0x65   : > { %v316_v13 = vadd.f32 %v315_v1, %v1662_v62  ;;  %v1744_v0 = vld [vmem:[%s1514_s9 + $0x158] sm:$0xff]  ;;  %v581_v1 = vld [vmem:[%s2474_s1 + $0xa0] sm:$0xff] }
  0x66   : > { %v288_v18 = vadd.f32 %v287_v11, %v1673_v3  ;;  %v580_v11 = vld [vmem:[%s2474_s1 + $0x98] sm:$0xff] }
  0x67   : > { %v317_v21 = vadd.f32 %v316_v13, %v1676_v4  ;;  %v1755_v13 = vld [vmem:[%s1514_s9 + $0x160] sm:$0xff] }
  0x68   : > { %v289_v26 = vadd.f32 %v288_v18, %v1684_v14  ;;  %v1758_v18 = vld [vmem:[%s1514_s9 + $0x168] sm:$0xff] }
  0x69   : > { %v318_v27 = vadd.f32 %v317_v21, %v1687_v17  ;;  %v579_v21 = vld [vmem:[%s2474_s1 + $0x90] sm:$0xff] }
  0x6a   : > { %v290_v33 = vadd.f32 %v289_v26, %v1692_v22 }
  0x6b   : > { %657 = vperm.xlu2 %1210, %v575_v63   ;;  %v319_v36 = vadd.f32 %v318_v27, %v1695_v25  ;;  %v1741_v63 = vld [vmem:[%s1514_s9 + $0x150] sm:$0xff] }
  0x6c   : > { %652 = vperm.xlu1 %1209, %v574_v2   ;;  %647 = vperm.xlu0 %1208, %v573_v5   ;;  %v291_v45 = vadd.f32 %v290_v33, %v1700_v28  ;;  %v1769_v33 = vld [vmem:[%s1514_s9 + $0x178] sm:$0xff] }
  0x6d   : > { %v320_v46 = vadd.f32 %v319_v36, %v1703_v31 }
  0x6e   : > { %v292_v51 = vadd.f32 %v291_v45, %v1714_v40 }
  0x6f   : > { %v321_v52 = vadd.f32 %v320_v46, %v1717_v41  ;;  %v584_v46 = vld [vmem:[%s2474_s1 + $0xb8] sm:$0xff] }
  0x70   : > { %v293_v59 = vadd.f32 %v292_v51, %v1725_v47  ;;  %v583_v51 = vld [vmem:[%s2474_s1 + $0xb0] sm:$0xff] }
  0x71   : > { %v322_v60 = vadd.f32 %v321_v52, %v1728_v50  ;;  %v582_v52 = vld [vmem:[%s2474_s1 + $0xa8] sm:$0xff] }
  0x72   : > { %v294_v2 = vadd.f32 %v293_v59, %v1733_v55 }
  0x73   : > { %672 = vperm.xlu2 %1210, %v578_v32   ;;  %v323_v5 = vadd.f32 %v322_v60, %v1736_v56  ;;  %v1766_v32 = vld [vmem:[%s1514_s9 + $0x170] sm:$0xff]  ;;  %s1002_s9 = ssub.s32 (%p1456_p9), 5, %s1120_s28 }
  0x74   : > { %667 = vperm.xlu1 %1209, %v577_v37   ;;  %662 = vperm.xlu0 %1208, %v576_v44   ;;  %v295_v26 = vadd.f32 %v294_v2, %v1741_v63  ;;  %p1003_p8 = scmp.lt.s32.totalorder (%p1456_p9), %s1002_s9, 2 }
  0x75   : > { %v324_v27 = vadd.f32 %v323_v5, %v1744_v0  ;;  %v755_v5 = vld [vmem:[%s2475_s2 + $0x10] sm:$0xff] }
  0x76   : > { %v296_v36 = vadd.f32 %v295_v26, %v1755_v13 }
  0x77   : > { %v325_v37 = vadd.f32 %v324_v27, %v1758_v18 }
  0x78   : > { %v297_v44 = vadd.f32 %v296_v36, %v1766_v32 }
  0x79   : > { %v326_v45 = vadd.f32 %v325_v37, %v1769_v33 }
  0x7a   : > { %v298_v59 = vrot.slane %v297_v44, 4 }
  0x7b   : > { %687 = vperm.xlu2 %1210, %v581_v1   ;;  %v327_v60 = vrot.slane %v326_v45, 4 }
  0x7c   : > { %682 = vperm.xlu1 %1209, %v580_v11   ;;  %677 = vperm.xlu0 %1208, %v579_v21   ;;  %v299_v1 = vadd.f32 %v298_v59, %v297_v44  ;;  %v754_v11 = vld [vmem:[%s2475_s2 + $0x8] sm:$0xff]  ;;  %v753_v21 = vld [vmem:[%s2475_s2] sm:$0xff] }
  0x7d   : > { %v328_v2 = vadd.f32 %v327_v60, %v326_v45  ;;  %v758_v44 = vld [vmem:[%s2475_s2 + $0x28] sm:$0xff]  ;;  %v757_v45 = vld [vmem:[%s2475_s2 + $0x20] sm:$0xff] }
  0x7e   : > { %v300_v26 = vrot.slane %v299_v1, 2 }
  0x7f   : > { %v329_v27 = vrot.slane %v328_v2, 2 }
  0x80   : > { %v301_v36 = vadd.f32 %v300_v26, %v299_v1  ;;  %v761_v1 = vld [vmem:[%s2475_s2 + $0x40] sm:$0xff] }
  0x81   : > { %v330_v37 = vadd.f32 %v329_v27, %v328_v2  ;;  %v760_v2 = vld [vmem:[%s2475_s2 + $0x38] sm:$0xff] }
  0x83   : > { %702 = vperm.xlu2 %1210, %v584_v46   ;;  %v756_v46 = vld [vmem:[%s2475_s2 + $0x18] sm:$0xff] }
  0x84   : > { %697 = vperm.xlu1 %1209, %v583_v51   ;;  %692 = vperm.xlu0 %1208, %v582_v52   ;;  %v302_v51 = vrot.slane %v301_v36, 1  ;;  %v331_v52 = vrot.slane %v330_v37, 1 }
  0x86   : > { %v303_v59 = vadd.f32 %v302_v51, %v301_v36  ;;  %v332_v60 = vadd.f32 %v331_v52, %v330_v37 }
  0x8b   : > { %789 = vperm.xlu2 %1210, %v755_v5   ;;  %v759_v5 = vld [vmem:[%s2475_s2 + $0x30] sm:$0xff] }
  0x8c   : > { %784 = vperm.xlu1 %1209, %v754_v11   ;;  %779 = vperm.xlu0 %1208, %v753_v21   ;;  %v1811_v11 = vmul.f32 0.0052083335, %v303_v59  ;;  %v1813_v21 = vmul.f32 0.0052083335, %v332_v60 }
  0x8e   : > { %v1817_v26 = vsub.f32 %v1536_v6, %v1811_v11  ;;  %v1821_v27 = vsub.f32 %v1542_v8, %v1811_v11  ;;  %v1825_v36 = vsub.f32 %v1539_v7, %v1813_v21  ;;  %v1829_v37 = vsub.f32 %v1545_v9, %v1813_v21  ;;  %v764_v6 = vld [vmem:[%s2475_s2 + $0x58] sm:$0xff]  ;;  %v763_v8 = vld [vmem:[%s2475_s2 + $0x50] sm:$0xff]  ;;  %v762_v9 = vld [vmem:[%s2475_s2 + $0x48] sm:$0xff] }
  0x8f   : > { %v1843_v7 = vsub.f32 %v1554_v12, %v1813_v21  ;;  %v1858_v51 = vsub.f32 %v1564_v16, %v1813_v21  ;;  %v1872_v16 = vsub.f32 %v1572_v20, %v1813_v21 }
  0x90   : > { %v384_v12 = vmul.f32 %v1825_v36, %v1825_v36  ;;  %v386_v52 = vmul.f32 %v1829_v37, %v1829_v37 }
  0x91   : > { %2518 = vst [vmem:[#allocation14_spill] sm:$0xff] %v1858_v51  ;;  %v388_v60 = vmul.f32 %v1843_v7, %v1843_v7  ;;  %v390_v20 = vmul.f32 %v1858_v51, %v1858_v51 }
  0x92   : > { %2519 = vst [vmem:[#allocation15_spill] sm:$0xff] %v1872_v16 }
  0x93   : > { %804 = vperm.xlu2 %1210, %v758_v44   ;;  %v1833_v44 = vsub.f32 %v1548_v10, %v1811_v11  ;;  %v1850_v10 = vsub.f32 %v1561_v15, %v1811_v11  ;;  %v1866_v15 = vsub.f32 %v1569_v19, %v1811_v11 }
  0x94   : > { %799 = vperm.xlu1 %1209, %v757_v45   ;;  %794 = vperm.xlu0 %1208, %v756_v46   ;;  %v383_v45 = vmul.f32 %v1817_v26, %v1817_v26  ;;  %v385_v46 = vmul.f32 %v1821_v27, %v1821_v27 }
  0x95   : > { %2517 = vst [vmem:[#allocation13_spill] sm:$0xff] %v1850_v10  ;;  %v387_v59 = vmul.f32 %v1833_v44, %v1833_v44  ;;  %v389_v19 = vmul.f32 %v1850_v10, %v1850_v10  ;;  %v1898_v10 = vsub.f32 %v1594_v30, %v1813_v21 }
  0x9b   : > { %819 = vperm.xlu2 %1210, %v761_v1  }
  0x9c   : > { %814 = vperm.xlu1 %1209, %v760_v2   ;;  %809 = vperm.xlu0 %1208, %v759_v5   ;;  %v1880_v2 = vsub.f32 %v1577_v23, %v1811_v11  ;;  %v431_v5 = vadd.f32 %v385_v46, %v383_v45  ;;  %v391_v23 = vmul.f32 %v1866_v15, %v1866_v15  ;;  %v767_v46 = vld [vmem:[%s2475_s2 + $0x70] sm:$0xff] }
  0x9e   : > { %v393_v30 = vmul.f32 %v1880_v2, %v1880_v2 }
  0xa3   : > { %834 = vperm.xlu2 %1210, %v764_v6   ;;  %v1886_v6 = vsub.f32 %v1580_v24, %v1813_v21  ;;  %v392_v24 = vmul.f32 %v1872_v16, %v1872_v16 }
  0xa4   : > { %829 = vperm.xlu1 %1209, %v763_v8   ;;  %824 = vperm.xlu0 %1208, %v762_v9   ;;  %v460_v8 = vadd.f32 %v386_v52, %v384_v12  ;;  %v1892_v9 = vsub.f32 %v1591_v29, %v1811_v11  ;;  %v766_v29 = vld [vmem:[%s2475_s2 + $0x68] sm:$0xff]  ;;  %v1910_v12 = vsub.f32 %v1602_v34, %v1811_v11 }
  0xa5   : > { %v1876_v1 = vpop.permute.xlu2 %607  ;;  %v1925_v34 = vsub.f32 %v1610_v38, %v1811_v11 }
  0xa6   : > { %2520 = vst [vmem:[#allocation16_spill] sm:$0xff] %v1876_v1  ;;  %v432_v1 = vadd.f32 %v431_v5, %v387_v59  ;;  %v461_v45 = vadd.f32 %v460_v8, %v388_v60  ;;  %v765_v59 = vld [vmem:[%s2475_s2 + $0x60] sm:$0xff]  ;;  %v1919_v60 = vsub.f32 %v1605_v35, %v1813_v21  ;;  %v394_v5 = vmul.f32 %v1886_v6, %v1886_v6 }
  0xa7   : > { %v395_v51 = vmul.f32 %v1892_v9, %v1892_v9  ;;  %v396_v35 = vmul.f32 %v1898_v10, %v1898_v10  ;;  %v397_v38 = vmul.f32 %v1910_v12, %v1910_v12 }
  0xa8   : > { %v433_v52 = vadd.f32 %v432_v1, %v389_v19  ;;  %v462_v8 = vadd.f32 %v461_v45, %v390_v20  ;;  %v1931_v19 = vsub.f32 %v1613_v39, %v1813_v21  ;;  %v1937_v20 = vsub.f32 %v1618_v42, %v1811_v11 }
  0xa9   : > { %v398_v39 = vmul.f32 %v1919_v60, %v1919_v60  ;;  %v399_v42 = vmul.f32 %v1925_v34, %v1925_v34 }
  0xaa   : > { %v434_v1 = vadd.f32 %v433_v52, %v391_v23  ;;  %v463_v16 = vadd.f32 %v462_v8, %v392_v24  ;;  %2521 = vst [vmem:[#allocation17_spill] sm:$0xff] %v1937_v20  ;;  %v1951_v24 = vsub.f32 %v1632_v48, %v1811_v11  ;;  %v769_v48 = vld [vmem:[%s2475_s2 + $0x80] sm:$0xff]  ;;  %v768_v8 = vld [vmem:[%s2475_s2 + $0x78] sm:$0xff] }
  0xab   : > { %849 = vperm.xlu2 %1210, %v767_v46   ;;  %v1945_v46 = vsub.f32 %v1621_v43, %v1813_v21  ;;  %v400_v43 = vmul.f32 %v1931_v19, %v1931_v19 }
  0xac   : > { %844 = vperm.xlu1 %1209, %v766_v29   ;;  %839 = vperm.xlu0 %1208, %v765_v59   ;;  %v435_v45 = vadd.f32 %v434_v1, %v393_v30  ;;  %v464_v29 = vadd.f32 %v463_v16, %v394_v5  ;;  %v1957_v30 = vsub.f32 %v1635_v49, %v1813_v21  ;;  %v770_v16 = vld [vmem:[%s2475_s2 + $0x88] sm:$0xff] }
  0xad   : > { %v1941_v23 = vpop.permute.xlu2 %612  ;;  %v1969_v5 = vsub.f32 %v1643_v53, %v1811_v11  ;;  %v401_v49 = vmul.f32 %v1937_v20, %v1937_v20  ;;  %v1978_v1 = vsub.f32 %v1646_v54, %v1813_v21  ;;  %v1984_v53 = vsub.f32 %v1651_v57, %v1811_v11 }
  0xae   : > { %v436_v52 = vadd.f32 %v435_v45, %v395_v51  ;;  %v465_v59 = vadd.f32 %v464_v29, %v396_v35  ;;  %v402_v35 = vmul.f32 %v1945_v46, %v1945_v46  ;;  %v403_v29 = vmul.f32 %v1951_v24, %v1951_v24 }
  0xaf   : > { %v404_v54 = vmul.f32 %v1957_v30, %v1957_v30  ;;  %v405_v57 = vmul.f32 %v1969_v5, %v1969_v5 }
  0xb0   : > { %v437_v51 = vadd.f32 %v436_v52, %v397_v38  ;;  %v466_v45 = vadd.f32 %v465_v59, %v398_v39  ;;  %v1990_v52 = vsub.f32 %v1654_v58, %v1813_v21  ;;  %v1996_v39 = vsub.f32 %v1659_v61, %v1811_v11 }
  0xb1   : > { %v406_v58 = vmul.f32 %v1978_v1, %v1978_v1  ;;  %v407_v61 = vmul.f32 %v1984_v53, %v1984_v53 }
  0xb2   : > { %v438_v38 = vadd.f32 %v437_v51, %v399_v42  ;;  %2522 = vst [vmem:[#allocation18_spill] sm:$0xff] %v1990_v52  ;;  %v467_v20 = vadd.f32 %v466_v45, %v400_v43  ;;  %v2010_v43 = vsub.f32 %v1673_v3, %v1811_v11  ;;  %v772_v3 = vld [vmem:[%s2475_s2 + $0x98] sm:$0xff] }
  0xb3   : > { %864 = vperm.xlu2 %1210, %v770_v16   ;;  %v2004_v16 = vsub.f32 %v1662_v62, %v1813_v21  ;;  %v408_v62 = vmul.f32 %v1990_v52, %v1990_v52 }
  0xb4   : > { %859 = vperm.xlu1 %1209, %v769_v48   ;;  %854 = vperm.xlu0 %1208, %v768_v8   ;;  %v439_v59 = vadd.f32 %v438_v38, %v401_v49  ;;  %v468_v48 = vadd.f32 %v467_v20, %v402_v35  ;;  %v2016_v49 = vsub.f32 %v1676_v4, %v1813_v21  ;;  %v773_v20 = vld [vmem:[%s2475_s2 + $0xa0] sm:$0xff] }
  0xb5   : > { %v2000_v42 = vpop.permute.xlu2 %627  ;;  %v2028_v35 = vsub.f32 %v1684_v14, %v1811_v11  ;;  %v409_v4 = vmul.f32 %v1996_v39, %v1996_v39  ;;  %v2037_v38 = vsub.f32 %v1687_v17, %v1813_v21  ;;  %v2043_v14 = vsub.f32 %v1692_v22, %v1811_v11 }
  0xb6   : > { %v440_v51 = vadd.f32 %v439_v59, %v403_v29  ;;  %v469_v8 = vadd.f32 %v468_v48, %v404_v54  ;;  %v771_v29 = vld [vmem:[%s2475_s2 + $0x90] sm:$0xff]  ;;  %v410_v54 = vmul.f32 %v2004_v16, %v2004_v16  ;;  %v411_v48 = vmul.f32 %v2010_v43, %v2010_v43 }
  0xb7   : > { %2523 = vst [vmem:[#allocation19_spill] sm:$0xff] %v2028_v35  ;;  %v412_v17 = vmul.f32 %v2016_v49, %v2016_v49  ;;  %v413_v22 = vmul.f32 %v2028_v35, %v2028_v35  ;;  %v2112_v35 = vsub.f32 %v1736_v56, %v1813_v21 }
  0xb8   : > { %v441_v45 = vadd.f32 %v440_v51, %v405_v57  ;;  %2524 = vst [vmem:[#allocation20_spill] sm:$0xff] %v2037_v38  ;;  %v470_v59 = vadd.f32 %v469_v8, %v406_v58  ;;  %v2049_v51 = vsub.f32 %v1695_v25, %v1813_v21  ;;  %v2055_v58 = vsub.f32 %v1700_v28, %v1811_v11 }
  0xb9   : > { %2525 = vst [vmem:[#allocation21_spill] sm:$0xff] %v2043_v14  ;;  %v2065_v25 = vsub.f32 %v1703_v31, %v1813_v21  ;;  %v2073_v28 = vsub.f32 %v1714_v40, %v1811_v11 }
  0xba   : > { %v442_v57 = vadd.f32 %v441_v45, %v407_v61  ;;  %2526 = vst [vmem:[#allocation22_spill] sm:$0xff] %v2049_v51  ;;  %v471_v52 = vadd.f32 %v470_v59, %v408_v62  ;;  %v414_v62 = vmul.f32 %v2037_v38, %v2037_v38  ;;  %v2079_v59 = vsub.f32 %v1717_v41, %v1813_v21  ;;  %v775_v41 = vld [vmem:[%s2475_s2 + $0xb0] sm:$0xff] }
  0xbb   : > { %879 = vperm.xlu2 %1210, %v773_v20   ;;  %2527 = vst [vmem:[#allocation23_spill] sm:$0xff] %v2073_v28  ;;  %v416_v31 = vmul.f32 %v2049_v51, %v2049_v51  ;;  %v417_v40 = vmul.f32 %v2055_v58, %v2055_v58 }
  0xbc   : > { %874 = vperm.xlu1 %1209, %v772_v3   ;;  %869 = vperm.xlu0 %1208, %v771_v29   ;;  %v443_v8 = vadd.f32 %v442_v57, %v409_v4  ;;  %v472_v3 = vadd.f32 %v471_v52, %v410_v54  ;;  %v415_v4 = vmul.f32 %v2043_v14, %v2043_v14 }
  0xbd   : > { %v2059_v61 = vpop.permute.xlu2 %642  ;;  %2528 = vst [vmem:[#allocation24_spill] sm:$0xff] %v2079_v59  ;;  %v2085_v52 = vsub.f32 %v1725_v47, %v1811_v11  ;;  %v2100_v47 = vsub.f32 %v1728_v50, %v1813_v21  ;;  %v420_v50 = vmul.f32 %v2079_v59, %v2079_v59 }
  0xbe   : > { %v2061_v20 = vpop.permute.xlu1 %597  ;;  %v2069_v45 = vpop.permute.xlu0 %587  ;;  %v444_v29 = vadd.f32 %v443_v8, %v411_v48  ;;  %v473_v57 = vadd.f32 %v472_v3, %v412_v17  ;;  %v776_v48 = vld [vmem:[%s2475_s2 + $0xb8] sm:$0xff]  ;;  %v774_v17 = vld [vmem:[%s2475_s2 + $0xa8] sm:$0xff]  ;;  %v418_v8 = vmul.f32 %v2065_v25, %v2065_v25  ;;  %v2106_v3 = vsub.f32 %v1733_v55, %v1811_v11 }
  0xbf   : > { %2529 = vst [vmem:[#allocation25_spill] sm:$0xff] %v2085_v52  ;;  %v421_v55 = vmul.f32 %v2085_v52, %v2085_v52  ;;  %v422_v56 = vmul.f32 %v2100_v47, %v2100_v47 }
  0xc0   : > { %v445_v54 = vadd.f32 %v444_v29, %v413_v22  ;;  %2530 = vst [vmem:[#allocation26_spill] sm:$0xff] %v2100_v47  ;;  %v474_v22 = vadd.f32 %v473_v57, %v414_v62  ;;  %v419_v29 = vmul.f32 %v2073_v28, %v2073_v28  ;;  %v2118_v62 = vsub.f32 %v1741_v63, %v1811_v11 }
  0xc1   : > { %v423_v63 = vmul.f32 %v2106_v3, %v2106_v3 }
  0xc2   : > { %v446_v38 = vadd.f32 %v445_v54, %v415_v4  ;;  %v475_v51 = vadd.f32 %v474_v22, %v416_v31  ;;  %2531 = vst [vmem:[#allocation27_spill] sm:$0xff] %v2118_v62  ;;  %v2124_v4 = vsub.f32 %v1744_v0, %v1813_v21  ;;  %v2132_v31 = vsub.f32 %v1755_v13, %v1811_v11 }
  0xc3   : > { %894 = vperm.xlu2 %1210, %v776_v48   ;;  %v2140_v0 = vsub.f32 %v1758_v18, %v1813_v21  ;;  %v2148_v13 = vsub.f32 %v1766_v32, %v1811_v11 }
  0xc4   : > { %889 = vperm.xlu1 %1209, %v775_v41   ;;  %884 = vperm.xlu0 %1208, %v774_v17   ;;  %v447_v57 = vadd.f32 %v446_v38, %v417_v40  ;;  %2532 = vst [vmem:[#allocation28_spill] sm:$0xff] %v2124_v4  ;;  %v476_v54 = vadd.f32 %v475_v51, %v418_v8 }
  0xc5   : > { %v2128_v48 = vpop.permute.xlu2 %657  ;;  %2533 = vst [vmem:[#allocation29_spill] sm:$0xff] %v2132_v31  ;;  %v424_v38 = vmul.f32 %v2112_v35, %v2112_v35  ;;  %v425_v8 = vmul.f32 %v2118_v62, %v2118_v62  ;;  %v426_v18 = vmul.f32 %v2124_v4, %v2124_v4  ;;  %v428_v32 = vmul.f32 %v2140_v0, %v2140_v0 }
  0xc6   : > { %v448_v41 = vadd.f32 %v447_v57, %v419_v29  ;;  %v2136_v17 = vpop.permute.xlu1 %602  ;;  %2534 = vst [vmem:[#allocation30_spill] sm:$0xff] %v2140_v0  ;;  %v477_v51 = vadd.f32 %v476_v54, %v420_v50  ;;  %v2144_v40 = vpop.permute.xlu0 %592  ;;  %v2154_v29 = vsub.f32 %v1769_v33, %v1813_v21  ;;  %v427_v50 = vmul.f32 %v2132_v31, %v2132_v31 }
  0xc7   : > { %v429_v62 = vmul.f32 %v2148_v13, %v2148_v13 }
  0xc8   : > { %v449_v22 = vadd.f32 %v448_v41, %v421_v55  ;;  %v478_v57 = vadd.f32 %v477_v51, %v422_v56  ;;  %v430_v33 = vmul.f32 %v2154_v29, %v2154_v29 }
  0xca   : > { %v450_v54 = vadd.f32 %v449_v22, %v423_v63  ;;  %v479_v11 = vadd.f32 %v478_v57, %v424_v38 }
  0xcc   : > { %v451_v55 = vadd.f32 %v450_v54, %v425_v8  ;;  %v480_v21 = vadd.f32 %v479_v11, %v426_v18 }
  0xcd   : > { %v2166_v4 = vpop.permute.xlu2 %672 }
  0xce   : > { %v452_v41 = vadd.f32 %v451_v55, %v427_v50  ;;  %v481_v59 = vadd.f32 %v480_v21, %v428_v32  ;;  %v2168_v51 = vpop.permute.xlu1 %622  ;;  %v2170_v22 = vpop.permute.xlu0 %617 }
  0xd0   : > { %v453_v56 = vadd.f32 %v452_v41, %v429_v62  ;;  %v482_v63 = vadd.f32 %v481_v59, %v430_v33 }
  0xd2   : > { %v454_v0 = vrot.slane %v453_v56, 4  ;;  %v483_v38 = vrot.slane %v482_v63, 4 }
  0xd4   : > { %v455_v57 = vadd.f32 %v454_v0, %v453_v56  ;;  %v484_v31 = vadd.f32 %v483_v38, %v482_v63 }
  0xd5   : > { %v2172_v52 = vpop.permute.xlu2 %687 }
  0xd6   : > { %v456_v28 = vrot.slane %v455_v57, 2  ;;  %v485_v8 = vrot.slane %v484_v31, 2  ;;  %v2174_v50 = vpop.permute.xlu1 %637  ;;  %v2176_v62 = vpop.permute.xlu0 %632 }
  0xd8   : > { %v457_v54 = vadd.f32 %v456_v28, %v455_v57  ;;  %v486_v47 = vadd.f32 %v485_v8, %v484_v31 }
  0xda   : > { %v458_v18 = vrot.slane %v457_v54, 1  ;;  %v487_v32 = vrot.slane %v486_v47, 1 }
  0xdc   : > { %v459_v11 = vadd.f32 %v458_v18, %v457_v54  ;;  %v488_v59 = vadd.f32 %v487_v32, %v486_v47 }
  0xdd   : > { %v2178_v0 = vpop.permute.xlu2 %702 }
  0xde   : > { %v489_v55 = vmul.f32 0.0052083335, %v459_v11  ;;  %v490_v33 = vmul.f32 0.0052083335, %v488_v59  ;;  %2535 = vst [vmem:[#allocation31_spill] sm:$0xff] %v2178_v0  ;;  %v2180_v28 = vpop.permute.xlu1 %652  ;;  %v2182_v31 = vpop.permute.xlu0 %647 }
  0xdf   : > { %2536 = vst [vmem:[#allocation32_spill] sm:$0xff] %v2180_v28 }
  0xe0   : > { %v491_v21 = vadd.f32 0.0001, %v489_v55  ;;  %v492_v41 = vadd.f32 0.0001, %v490_v33  ;;  %2537 = vst [vmem:[#allocation33_spill] sm:$0xff] %v2182_v31 }
  0xe2   : > { %1211 = vrsqrt.f32 %v491_v21  ;;  %vm499_vm0 = vweird.f32 %v491_v21  ;;  %vm509_vm2 = vweird.f32 %v492_v41 }
  0xe3   : > { %1213 = vrsqrt.f32 %v492_v41 }
  0xe5   : > { %v790_v8 = vpop.permute.xlu2 %789 }
  0xe6   : > { %v2184_v14 = vpop.permute.xlu1 %667  ;;  %v2186_v18 = vpop.permute.xlu0 %662 }
  0xe7   : > { %2538 = vst [vmem:[#allocation34_spill] sm:$0xff] %v2184_v14 }
  0xe8   : > { %v1212_v56 = vpop.eup %1211 }
  0xe9   : > { %v1214_v63 = vpop.eup %1213  ;;  %v494_v38 = vmul.f32 %v1212_v56, %v491_v21  ;;  %vm500_vm1 = vweird.f32 %v1212_v56 }
  0xea   : > { %v504_v57 = vmul.f32 %v1214_v63, %v492_v41  ;;  %vm510_vm3 = vweird.f32 %v1214_v63  ;;  %vm501_vm4 = vmor %vm499_vm0, %vm500_vm1 }
  0xeb   : > { %v495_v47 = vmul.f32 %v1212_v56, %v494_v38  ;;  %vm511_vm5 = vmor %vm509_vm2, %vm510_vm3 }
  0xec   : > { %v505_v54 = vmul.f32 %v1214_v63, %v504_v57 }
  0xed   : > { %v496_v32 = vmul.f32 0.5, %v495_v47  ;;  %v805_v59 = vpop.permute.xlu2 %804 }
  0xee   : > { %v506_v11 = vmul.f32 0.5, %v505_v54  ;;  %v2188_v55 = vpop.permute.xlu1 %682  ;;  %v2190_v31 = vpop.permute.xlu0 %677 }
  0xef   : > { %2539 = vst [vmem:[#allocation35_spill] sm:$0xff] %v2188_v55  ;;  %v497_v33 = vsub.f32 1.5, %v496_v32 }
  0xf0   : > { %v507_v28 = vsub.f32 1.5, %v506_v11 }
  0xf1   : > { %v498_v0 = vmul.f32 %v1212_v56, %v497_v33 }
  0xf2   : > { %v508_v14 = vmul.f32 %v1214_v63, %v507_v28 }
  0xf3   : > { %v2194_v47 = vsel %vm501_vm4, %v1212_v56, %v498_v0 }
  0xf4   : > { %v2196_v54 = vsel %vm511_vm5, %v1214_v63, %v508_v14  ;;  %v517_v21 = vmul.f32 %v2194_v47, %v1833_v44  ;;  %v523_v32 = vmul.f32 %v2194_v47, %v1880_v2  ;;  %v529_v0 = vmul.f32 %v2194_v47, %v1925_v34 }
  0xf5   : > { %v820_v38 = vpop.permute.xlu2 %819  ;;  %v518_v41 = vmul.f32 %v2196_v54, %v1843_v7  ;;  %v524_v28 = vmul.f32 %v2196_v54, %v1886_v6  ;;  %v530_v14 = vmul.f32 %v2196_v54, %v1931_v19  ;;  %v535_v34 = vmul.f32 %v2194_v47, %v1969_v5 }
  0xf6   : > { %v2192_v57 = vpop.permute.xlu1 %697  ;;  %v2198_v55 = vpop.permute.xlu0 %692  ;;  %v709_v56 = vmul.f32 %v2061_v20, %v517_v21  ;;  %v715_v2 = vmul.f32 %v1941_v23, %v523_v32  ;;  %v536_v21 = vmul.f32 %v2196_v54, %v1978_v1  ;;  %v516_v5 = vmul.f32 %v2196_v54, %v1829_v37 }
  0xf7   : > { %2540 = vst [vmem:[#allocation36_spill] sm:$0xff] %v2192_v57  ;;  %v710_v44 = vmul.f32 %v2061_v20, %v518_v41  ;;  %v716_v6 = vmul.f32 %v1941_v23, %v524_v28  ;;  %v721_v57 = vmul.f32 %v2000_v42, %v529_v0  ;;  %v722_v19 = vmul.f32 %v2000_v42, %v530_v14 }
  0xf8   : > { %2541 = vst [vmem:[#allocation37_spill] sm:$0xff] %v2198_v55  ;;  %v901_v7 = vadd.f32 %v790_v8, %v709_v56  ;;  %v515_v20 = vmul.f32 %v2194_v47, %v1821_v27  ;;  %v513_v23 = vmul.f32 %v2194_v47, %v1817_v26  ;;  %v907_v42 = vadd.f32 %v805_v59, %v715_v2  ;;  %v2543_v2 = vld [vmem:[#allocation13_spill] sm:$0xff] }
  0xf9   : > { %v902_v33 = vadd.f32 %v790_v8, %v710_v44  ;;  %v908_v1 = vadd.f32 %v805_v59, %v716_v6  ;;  %v514_v27 = vmul.f32 %v2196_v54, %v1825_v36  ;;  %v727_v8 = vmul.f32 %v2059_v61, %v535_v34 }
  0xfa   : > { %949 = vst [vmem:[%s2226_s5 + $0x20] sm:$0xff] %v901_v7  ;;  %v541_v41 = vmul.f32 %v2194_v47, %v2010_v43  ;;  %v913_v32 = vadd.f32 %v820_v38, %v721_v57  ;;  %v914_v28 = vadd.f32 %v820_v38, %v722_v19  ;;  %v728_v26 = vmul.f32 %v2059_v61, %v536_v21  ;;  %v2542_v61 = vld [vmem:[#allocation15_spill] sm:$0xff]  ;;  %v2544_v21 = vld [vmem:[#allocation14_spill] sm:$0xff] }
  0xfb   : > { %950 = vst [vmem:[%s2226_s5 + $0x28] sm:$0xff] %v902_v33  ;;  %v542_v37 = vmul.f32 %v2196_v54, %v2016_v49  ;;  %v707_v59 = vmul.f32 %v2144_v40, %v515_v20  ;;  %v521_v14 = vmul.f32 %v2194_v47, %v1866_v15  ;;  %v705_v43 = vmul.f32 %v2069_v45, %v513_v23  ;;  %v2545_v20 = vld [vmem:[#allocation16_spill] sm:$0xff] }
  0xfc   : > { %955 = vst [vmem:[%s2226_s5 + $0x50] sm:$0xff] %v907_v42  ;;  %v708_v56 = vmul.f32 %v2144_v40, %v516_v5  ;;  %v522_v57 = vmul.f32 %v2196_v54, %v2542_v61  ;;  %v706_v49 = vmul.f32 %v2069_v45, %v514_v27  ;;  %v733_v15 = vmul.f32 %v2128_v48, %v541_v41 }
  0xfd   : > { %v835_v63 = vpop.permute.xlu2 %834  ;;  %956 = vst [vmem:[%s2226_s5 + $0x58] sm:$0xff] %v908_v1  ;;  %v519_v6 = vmul.f32 %v2194_v47, %v2543_v2  ;;  %v734_v19 = vmul.f32 %v2128_v48, %v542_v37  ;;  %v520_v45 = vmul.f32 %v2196_v54, %v2544_v21  ;;  %v713_v23 = vmul.f32 %v2545_v20, %v521_v14 }
  0xfe   : > { %v785_v11 = vpop.permute.xlu1 %784  ;;  %v780_v55 = vpop.permute.xlu0 %779  ;;  %961 = vst [vmem:[%s2226_s5 + $0x80] sm:$0xff] %v913_v32  ;;  %v919_v38 = vadd.f32 %v835_v63, %v727_v8  ;;  %v920_v44 = vadd.f32 %v835_v63, %v728_v26  ;;  %v547_v5 = vmul.f32 %v2194_v47, %v2055_v58  ;;  %v714_v1 = vmul.f32 %v2545_v20, %v522_v57 }
  0xff   : > { %962 = vst [vmem:[%s2226_s5 + $0x88] sm:$0xff] %v914_v28  ;;  %v899_v7 = vadd.f32 %v785_v11, %v707_v59  ;;  %v900_v40 = vadd.f32 %v785_v11, %v708_v56  ;;  %v897_v34 = vadd.f32 %v780_v55, %v705_v43  ;;  %v898_v63 = vadd.f32 %v780_v55, %v706_v49  ;;  %v2546_v49 = vld [vmem:[#allocation17_spill] sm:$0xff] }
 0x100   : > { %967 = vst [vmem:[%s2226_s5 + $0xb0] sm:$0xff] %v919_v38  ;;  %v548_v11 = vmul.f32 %v2196_v54, %v2065_v25  ;;  %v711_v27 = vmul.f32 %v2136_v17, %v519_v6  ;;  %v527_v55 = vmul.f32 %v2194_v47, %v1910_v12  ;;  %v712_v58 = vmul.f32 %v2136_v17, %v520_v45 }
 0x101   : > { %968 = vst [vmem:[%s2226_s5 + $0xb8] sm:$0xff] %v920_v44  ;;  %v528_v41 = vmul.f32 %v2196_v54, %v1919_v60  ;;  %v739_v26 = vmul.f32 %v2166_v4, %v547_v5  ;;  %v525_v37 = vmul.f32 %v2194_v47, %v1892_v9  ;;  %v526_v17 = vmul.f32 %v2196_v54, %v1898_v10  ;;  %v2547_v5 = vld [vmem:[#allocation18_spill] sm:$0xff] }
 0x102   : > { %947 = vst [vmem:[%s2226_s5 + $0x10] sm:$0xff] %v899_v7  ;;  %v740_v59 = vmul.f32 %v2166_v4, %v548_v11  ;;  %v553_v14 = vmul.f32 %v2194_v47, %v2106_v3  ;;  %v554_v4 = vmul.f32 %v2196_v54, %v2112_v35  ;;  %v533_v38 = vmul.f32 %v2194_v47, %v1951_v24 }
 0x103   : > { %948 = vst [vmem:[%s2226_s5 + $0x18] sm:$0xff] %v900_v40  ;;  %v720_v43 = vmul.f32 %v2168_v51, %v528_v41  ;;  %v717_v56 = vmul.f32 %v2170_v22, %v525_v37  ;;  %v718_v3 = vmul.f32 %v2170_v22, %v526_v17  ;;  %v534_v57 = vmul.f32 %v2196_v54, %v1957_v30  ;;  %v2552_v17 = vld [vmem:[#allocation22_spill] sm:$0xff] }
 0x104   : > { %945 = vst [vmem:[%s2226_s5] sm:$0xff] %v897_v34  ;;  %v745_v35 = vmul.f32 %v2172_v52, %v553_v14  ;;  %v531_v44 = vmul.f32 %v2194_v47, %v2546_v49  ;;  %v746_v24 = vmul.f32 %v2172_v52, %v554_v4  ;;  %v725_v2 = vmul.f32 %v2174_v50, %v533_v38  ;;  %v2553_v14 = vld [vmem:[#allocation19_spill] sm:$0xff] }
 0x105   : > { %v850_v0 = vpop.permute.xlu2 %849  ;;  %946 = vst [vmem:[%s2226_s5 + $0x8] sm:$0xff] %v898_v63  ;;  %v726_v40 = vmul.f32 %v2174_v50, %v534_v57  ;;  %v559_v34 = vmul.f32 %v2194_v47, %v2148_v13  ;;  %v560_v21 = vmul.f32 %v2196_v54, %v2154_v29  ;;  %v539_v45 = vmul.f32 %v2194_v47, %v1996_v39 }
 0x106   : > { %v800_v36 = vpop.permute.xlu1 %799  ;;  %v795_v33 = vpop.permute.xlu0 %794  ;;  %v925_v42 = vadd.f32 %v850_v0, %v733_v15  ;;  %v926_v48 = vadd.f32 %v850_v0, %v734_v19  ;;  %v723_v19 = vmul.f32 %v2176_v62, %v531_v44  ;;  %v540_v13 = vmul.f32 %v2196_v54, %v2004_v16  ;;  %v2556_v44 = vld [vmem:[#allocation25_spill] sm:$0xff] }
 0x107   : > { %v905_v8 = vadd.f32 %v800_v36, %v713_v23  ;;  %v906_v32 = vadd.f32 %v800_v36, %v714_v1  ;;  %v903_v12 = vadd.f32 %v795_v33, %v711_v27  ;;  %v904_v60 = vadd.f32 %v795_v33, %v712_v58  ;;  %v2548_v1 = vld [vmem:[#allocation31_spill] sm:$0xff] }
 0x108   : > { %973 = vst [vmem:[%s2226_s5 + $0xe0] sm:$0xff] %v925_v42  ;;  %v719_v36 = vmul.f32 %v2168_v51, %v527_v55  ;;  %v532_v33 = vmul.f32 %v2196_v54, %v1945_v46  ;;  %v537_v23 = vmul.f32 %v2194_v47, %v1984_v53  ;;  %v538_v39 = vmul.f32 %v2196_v54, %v2547_v5 }
 0x109   : > { %974 = vst [vmem:[%s2226_s5 + $0xe8] sm:$0xff] %v926_v48  ;;  %v751_v11 = vmul.f32 %v2548_v1, %v559_v34  ;;  %v2549_v48 = vld [vmem:[#allocation32_spill] sm:$0xff] }
 0x10a   : > { %953 = vst [vmem:[%s2226_s5 + $0x40] sm:$0xff] %v905_v8  ;;  %v724_v50 = vmul.f32 %v2176_v62, %v532_v33  ;;  %v752_v62 = vmul.f32 %v2548_v1, %v560_v21  ;;  %v731_v16 = vmul.f32 %v2549_v48, %v539_v45  ;;  %v732_v27 = vmul.f32 %v2549_v48, %v540_v13  ;;  %v2550_v8 = vld [vmem:[#allocation33_spill] sm:$0xff] }
 0x10b   : > { %954 = vst [vmem:[%s2226_s5 + $0x48] sm:$0xff] %v906_v32  ;;  %v729_v58 = vmul.f32 %v2550_v8, %v537_v23  ;;  %v2561_v13 = vld [vmem:[#allocation29_spill] sm:$0xff]  ;;  %v2562_v23 = vld [vmem:[#allocation30_spill] sm:$0xff] }
 0x10c   : > { %951 = vst [vmem:[%s2226_s5 + $0x30] sm:$0xff] %v903_v12  ;;  %v2551_v12 = vld [vmem:[#allocation21_spill] sm:$0xff] }
 0x10d   : > { %v865_v28 = vpop.permute.xlu2 %864  ;;  %952 = vst [vmem:[%s2226_s5 + $0x38] sm:$0xff] %v904_v60  ;;  %v546_v60 = vmul.f32 %v2196_v54, %v2552_v17 }
 0x10e   : > { %v815_v25 = vpop.permute.xlu1 %814  ;;  %v810_v0 = vpop.permute.xlu0 %809  ;;  %v931_v9 = vadd.f32 %v865_v28, %v739_v26  ;;  %v932_v10 = vadd.f32 %v865_v28, %v740_v59  ;;  %v545_v59 = vmul.f32 %v2194_v47, %v2551_v12 }
 0x10f   : > { %v911_v61 = vadd.f32 %v815_v25, %v719_v36  ;;  %v912_v51 = vadd.f32 %v815_v25, %v720_v43  ;;  %v909_v7 = vadd.f32 %v810_v0, %v717_v56  ;;  %v910_v22 = vadd.f32 %v810_v0, %v718_v3  ;;  %v2554_v43 = vld [vmem:[#allocation20_spill] sm:$0xff] }
 0x110   : > { %979 = vst [vmem:[%s2226_s5 + $0x110] sm:$0xff] %v931_v9  ;;  %v730_v25 = vmul.f32 %v2550_v8, %v538_v39  ;;  %v543_v9 = vmul.f32 %v2194_v47, %v2553_v14  ;;  %v544_v4 = vmul.f32 %v2196_v54, %v2554_v43 }
 0x111   : > { %980 = vst [vmem:[%s2226_s5 + $0x118] sm:$0xff] %v932_v10  ;;  %v2555_v10 = vld [vmem:[#allocation34_spill] sm:$0xff] }
 0x112   : > { %959 = vst [vmem:[%s2226_s5 + $0x70] sm:$0xff] %v911_v61  ;;  %v737_v56 = vmul.f32 %v2555_v10, %v545_v59  ;;  %v738_v38 = vmul.f32 %v2555_v10, %v546_v60  ;;  %v735_v3 = vmul.f32 %v2186_v18, %v543_v9  ;;  %v736_v57 = vmul.f32 %v2186_v18, %v544_v4 }
 0x113   : > { %960 = vst [vmem:[%s2226_s5 + $0x78] sm:$0xff] %v912_v51 }
 0x114   : > { %957 = vst [vmem:[%s2226_s5 + $0x60] sm:$0xff] %v909_v7  ;;  %v551_v7 = vmul.f32 %v2194_v47, %v2556_v44 }
 0x115   : > { %v880_v15 = vpop.permute.xlu2 %879  ;;  %958 = vst [vmem:[%s2226_s5 + $0x68] sm:$0xff] %v910_v22 }
 0x116   : > { %v830_v30 = vpop.permute.xlu1 %829  ;;  %v937_v6 = vadd.f32 %v880_v15, %v745_v35  ;;  %v938_v52 = vadd.f32 %v880_v15, %v746_v24  ;;  %v825_v46 = vpop.permute.xlu0 %824  ;;  %v2557_v24 = vld [vmem:[#allocation26_spill] sm:$0xff] }
 0x117   : > { %v917_v63 = vadd.f32 %v830_v30, %v725_v2  ;;  %v918_v20 = vadd.f32 %v830_v30, %v726_v40  ;;  %v915_v29 = vadd.f32 %v825_v46, %v723_v19  ;;  %v916_v42 = vadd.f32 %v825_v46, %v724_v50  ;;  %v2558_v30 = vld [vmem:[#allocation23_spill] sm:$0xff] }
 0x118   : > { %985 = vst [vmem:[%s2226_s5 + $0x140] sm:$0xff] %v937_v6  ;;  %v552_v33 = vmul.f32 %v2196_v54, %v2557_v24  ;;  %v549_v2 = vmul.f32 %v2194_v47, %v2558_v30  ;;  %v2559_v6 = vld [vmem:[#allocation24_spill] sm:$0xff]  ;;  %v2560_v40 = vld [vmem:[#allocation35_spill] sm:$0xff] }
 0x119   : > { %986 = vst [vmem:[%s2226_s5 + $0x148] sm:$0xff] %v938_v52  ;;  %v550_v18 = vmul.f32 %v2196_v54, %v2559_v6  ;;  %v743_v34 = vmul.f32 %v2560_v40, %v551_v7 }
 0x11a   : > { %965 = vst [vmem:[%s2226_s5 + $0xa0] sm:$0xff] %v917_v63  ;;  %v744_v52 = vmul.f32 %v2560_v40, %v552_v33  ;;  %v741_v19 = vmul.f32 %v2190_v31, %v549_v2 }
 0x11b   : > { %966 = vst [vmem:[%s2226_s5 + $0xa8] sm:$0xff] %v918_v20  ;;  %v742_v21 = vmul.f32 %v2190_v31, %v550_v18  ;;  %v557_v20 = vmul.f32 %v2194_v47, %v2561_v13 }
 0x11c   : > { %963 = vst [vmem:[%s2226_s5 + $0x90] sm:$0xff] %v915_v29  ;;  %v558_v29 = vmul.f32 %v2196_v54, %v2562_v23 }
 0x11d   : > { %v895_v53 = vpop.permute.xlu2 %894  ;;  %964 = vst [vmem:[%s2226_s5 + $0x98] sm:$0xff] %v916_v42  ;;  %v2563_v42 = vld [vmem:[#allocation27_spill] sm:$0xff] }
 0x11e   : > { %v845_v55 = vpop.permute.xlu1 %844  ;;  %v943_v41 = vadd.f32 %v895_v53, %v751_v11  ;;  %v944_v32 = vadd.f32 %v895_v53, %v752_v62  ;;  %v840_v37 = vpop.permute.xlu0 %839  ;;  %v555_v1 = vmul.f32 %v2194_v47, %v2563_v42  ;;  %v2564_v11 = vld [vmem:[#allocation28_spill] sm:$0xff]  ;;  %v2566_v53 = vld [vmem:[#allocation37_spill] sm:$0xff] }
 0x11f   : > { %v923_v28 = vadd.f32 %v845_v55, %v731_v16  ;;  %v924_v26 = vadd.f32 %v845_v55, %v732_v27  ;;  %v921_v0 = vadd.f32 %v840_v37, %v729_v58  ;;  %v922_v36 = vadd.f32 %v840_v37, %v730_v25  ;;  %v2565_v62 = vld [vmem:[#allocation36_spill] sm:$0xff] }
 0x120   : > { %991 = vst [vmem:[%s2226_s5 + $0x170] sm:$0xff] %v943_v41  ;;  %v556_v31 = vmul.f32 %v2196_v54, %v2564_v11  ;;  %v749_v48 = vmul.f32 %v2565_v62, %v557_v20  ;;  %v750_v16 = vmul.f32 %v2565_v62, %v558_v29  ;;  %v747_v55 = vmul.f32 %v2566_v53, %v555_v1 }
 0x121   : > { %992 = vst [vmem:[%s2226_s5 + $0x178] sm:$0xff] %v944_v32 }
 0x122   : > { %971 = vst [vmem:[%s2226_s5 + $0xd0] sm:$0xff] %v923_v28  ;;  %v748_v8 = vmul.f32 %v2566_v53, %v556_v31 }
 0x123   : > { %972 = vst [vmem:[%s2226_s5 + $0xd8] sm:$0xff] %v924_v26 }
 0x124   : > { %969 = vst [vmem:[%s2226_s5 + $0xc0] sm:$0xff] %v921_v0 }
 0x125   : > { %970 = vst [vmem:[%s2226_s5 + $0xc8] sm:$0xff] %v922_v36 }
 0x126   : > { %v860_v61 = vpop.permute.xlu1 %859  ;;  %v855_v49 = vpop.permute.xlu0 %854 }
 0x127   : > { %v929_v51 = vadd.f32 %v860_v61, %v737_v56  ;;  %v930_v35 = vadd.f32 %v860_v61, %v738_v38  ;;  %v927_v22 = vadd.f32 %v855_v49, %v735_v3  ;;  %v928_v15 = vadd.f32 %v855_v49, %v736_v57 }
 0x129   : > { %977 = vst [vmem:[%s2226_s5 + $0x100] sm:$0xff] %v929_v51 }
 0x12a   : > { %978 = vst [vmem:[%s2226_s5 + $0x108] sm:$0xff] %v930_v35 }
 0x12b   : > { %975 = vst [vmem:[%s2226_s5 + $0xf0] sm:$0xff] %v927_v22 }
 0x12c   : > { %976 = vst [vmem:[%s2226_s5 + $0xf8] sm:$0xff] %v928_v15 }
 0x12e   : > { %v875_v46 = vpop.permute.xlu1 %874  ;;  %v870_v50 = vpop.permute.xlu0 %869 }
 0x12f   : > { %v935_v45 = vadd.f32 %v875_v46, %v743_v34  ;;  %v936_v63 = vadd.f32 %v875_v46, %v744_v52  ;;  %v933_v5 = vadd.f32 %v870_v50, %v741_v19  ;;  %v934_v39 = vadd.f32 %v870_v50, %v742_v21 }
 0x131   : > { %983 = vst [vmem:[%s2226_s5 + $0x130] sm:$0xff] %v935_v45 }
 0x132   : > { %984 = vst [vmem:[%s2226_s5 + $0x138] sm:$0xff] %v936_v63 }
 0x133   : > { %981 = vst [vmem:[%s2226_s5 + $0x120] sm:$0xff] %v933_v5 }
 0x134   : > { %982 = vst [vmem:[%s2226_s5 + $0x128] sm:$0xff] %v934_v39 }
 0x136   : > { %v890_v27 = vpop.permute.xlu1 %889  ;;  %v885_v47 = vpop.permute.xlu0 %884 }
 0x137   : > { %v941_v58 = vadd.f32 %v890_v27, %v749_v48  ;;  %v942_v41 = vadd.f32 %v890_v27, %v750_v16  ;;  %v939_v32 = vadd.f32 %v885_v47, %v747_v55  ;;  %v940_v28 = vadd.f32 %v885_v47, %v748_v8 }
 0x138   : > { %1000 = sbr.rel (!%p1456_p9) target bundleno = 354 (0x162), region = 40 }
 0x139   : > { %989 = vst [vmem:[%s2226_s5 + $0x160] sm:$0xff] %v941_v58 }
 0x13a   : > { %990 = vst [vmem:[%s2226_s5 + $0x168] sm:$0xff] %v942_v41 }
 0x13b   : > { %987 = vst [vmem:[%s2226_s5 + $0x150] sm:$0xff] %v939_v32 }
 0x13c   : > { %988 = vst [vmem:[%s2226_s5 + $0x158] sm:$0xff] %v940_v28 }
 0x13d   : > { %s2588_s9 = smov (!%p1003_p8, %s1002_s9), 2 }
 0x13e   : > { %s1005_s25 = smul.u32 192, %s2588_s9 }
 0x140   : > { %s1006_s17 = ssub.s32 384, %s1005_s25 }
 0x141   : > { %s1007_s21 = sshll.u32 %s1006_s17, 4 }
 0x142   : > { %1008 = vsyncadd %s994_s29, %s1007_s21  ;;  %p2405_p0 = scmp.ne.s32.totalorder %s1005_s25, 0  ;;  %s1131_s30 = smul.u32 120, %s1351_s16 }
 0x143   : > { %s1123_s15 = sshll.u32 %s2588_s9, 3  ;;  %s1016_s6 = sshll.u32 %s2226_s5, 4  ;;  %s2412_s6 = int_to_ptr.vmem [resolvable:$true] %s1016_s6 }
 0x144   : > { %s1011_s26 = sadd.s32 %s1131_s30, %s1120_s28  ;;  %s2415_s8 = smul.u32 3072, %s2588_s9 }
 0x145   : > { %s1122_s11 = sshll.u32 %s1011_s26, 3  ;;  %s1254_s16 = sshra.s32 %s2412_s6, 4  ;;  %s1255_s16 = int_to_ptr.vmem [resolvable:$true] %s1254_s16 }
 0x146   : > { %s1013_s24 = scalar_lea.hbm %s2476_s3, %s1122_s11  ;;  %s1256_s7 = sshrl.u32 %s2415_s8, 4 }
 0x147   : > { %s1018_s23 = sshll.u32 %s1013_s24, 4  ;;  %s1292_s22 = sshll.u32 %s1256_s7, 4  ;;  %s2420_s23 = int_to_ptr.hbm [resolvable:$true] %s1018_s23 }
 0x148   : > { %p1258_p9 = scmp.ne.s32.totalorder %s1292_s22, %s2415_s8  ;;  %s1259_s5 = sadd.s32 1, %s1256_s7 }
 0x149   : > { %s1369_s25 = smov [#allocation5]  }
 0x14a   : > { %s2590_s5 = smov (!%p1258_p9, %s1259_s5), %s1256_s7  ;;  %s1265_s17 = scalar_lea.vmem %s1369_s25, 768 }
 0x14b   : > { %s1261_s28 = scalar_lea.vmem %s1255_s16, %s2590_s5 }
 0x14c   : > { %p1262_p1 = scmp.ne.s32.totalorder %s1255_s16, %s1261_s28  ;;  %p1267_p4 = scmp.lt.s32.totalorder %s1265_s17, %s1261_s28 }
 0x14e   : > { %p1263_p2 = pnand %p1262_p1, %p2405_p0 }
 0x150   : > { %p1264_p3 = pneg %p1263_p2 }
 0x152   : > { %p1269_p5 = pnand %p1267_p4, %p1264_p3 }
 0x154   : > { %1272 = shalt.err (!%p1269_p5)
}
 0x155   : > { %s1273_s21 = sshra.s32 %s2420_s23, 4  ;;  %s1284_s20 = scalar_lea.hbm %s2476_s3, 1920  ;;  %s1274_s21 = int_to_ptr.hbm [resolvable:$true] %s1273_s21 }
 0x156   : > { %s1280_s30 = scalar_lea.hbm %s1274_s21, %s2590_s5  ;;  %p1285_p11 = scmp.lt.s32.totalorder %s1274_s21, %s2476_s3 }
 0x157   : > { %p1281_p6 = scmp.ne.s32.totalorder %s1274_s21, %s1280_s30  ;;  %p1286_p13 = scmp.lt.s32.totalorder %s1284_s20, %s1280_s30 }
 0x159   : > { %p1282_p7 = pnand %p1281_p6, %p2405_p0  ;;  %p1287_p8 = por %p1286_p13, %p1285_p11 }
 0x15b   : > { %p1283_p10 = pneg %p1282_p7 }
 0x15d   : > { %p1288_p9 = pnand %p1287_p8, %p1283_p10 }
 0x15f   : > { %1291 = shalt.err (!%p1288_p9)
}
 0x160   : > { %s1370_s16 = smov 256   ;;  %s1371_s7 = smov 640  }
 0x161   : > { %1024 = dma.vmem_to_hbm [thread:$0]  (%p2405_p0), %s2412_s6, %s2415_s8, %s2420_s23, %s994_s29, %s1370_s16, %s1371_s7, %s1123_s15  }
 0x162 PF: > { %p1138_p1 = scmp.ge.s32.totalorder %s1363_s19, 2  ;;  %s1033_s22 = sand.u32 1, %s1335_s12  }
 0x163   : > { %s1034_s5 = scalar_lea.sflag [#allocation4], %s1033_s22 }
 0x164   : > { %p1135_p2 = pnand %p1138_p1, %p1463_p12 }
 0x166   : > { %p1136_p3 = pneg %p1135_p2 }
 0x168   : > { %1330 = dma.done.wait (%p1136_p3), %s1034_s5, 6144  }
 0x169   : > { %1332 = vsyncadd (%p1136_p3), %s1034_s5, 4294961152  ;;  %s19_s19 = sadd.s32 1, %s1363_s19   ;;  %s2568_s18 = sld [smem:[#allocation12_spill]] }
 0x16a   : > { %p16_p4 = scmp.ge.s32.totalorder %s19_s19, 8   ;;  %s2569_s15 = sld [smem:[#allocation8_spill]] }
 0x16b   : > { %s2570_s16 = sld [smem:[#allocation9_spill]]  ;;  %s2573_s12 = smov %s1339_s13 }
 0x16c   : > { %s2571_s17 = sld [smem:[#allocation10_spill]]  ;;  %s2574_s13 = smov %s1343_s14 }
 0x16d   : > { %s2572_s29 = sld [smem:[#allocation11_spill]] }
 0x16f   : > { %s2575_s14 = smov %s2568_s18  ;;  %18 = sbr.rel (!%p16_p4) target bundleno = 7 (0x7), region = 77 }
 0x173   : > { %s2576_s18 = smov %s2572_s29 }
 0x174   :  { %1040 = vsyncpa [#allocation3], 1 }
 0x175   :  { %1042 = vsyncpa [#allocation3 + $0x1], 1 }
 0x176   :  { %1043 = vsyncpa [#allocation4], 1 }
 0x177   :  { %1045 = vsyncpa [#allocation4 + $0x1], 1 }

</bundles_post_ra>
